<compile_context>
chip_gen: v6e
topology: v6e:2x2x1
jax: 0.10.0
libtpu: 0.0.40
codegen_flags: <defaults>
</compile_context>

<pallas_src>
import math

import jax
import jax.numpy as jnp
from jax.experimental import pallas as pl
from jax.experimental.pallas import tpu as pltpu


# ----------------------------------------------------------------------------
# Kernel bodies
# ----------------------------------------------------------------------------
def _mlp_loc(obs_ref, w1_ref, b1_ref, w2_ref, b2_ref):
    """loc = tanh(obs @ W1 + b1) @ W2 + b2  (bf16 MXU operands, f32 accum)."""
    x = obs_ref[...].astype(jnp.bfloat16)                 # cast in-kernel (free-ish)
    h = jnp.dot(x, w1_ref[...], preferred_element_type=jnp.float32)
    h = jnp.tanh(h + b1_ref[...])                         # f32 VPU/EUP (v5e-safe)
    loc = jnp.dot(h.astype(jnp.bfloat16), w2_ref[...],
                  preferred_element_type=jnp.float32)
    return loc + b2_ref[...]


def _loc_kernel(obs_ref, w1_ref, b1_ref, w2_ref, b2_ref, out_ref):
    out_ref[...] = _mlp_loc(obs_ref, w1_ref, b1_ref, w2_ref,
                            b2_ref).astype(out_ref.dtype)


def _sample_kernel(obs_ref, eps_ref, w1_ref, b1_ref, w2_ref, b2_ref, out_ref):
    loc = _mlp_loc(obs_ref, w1_ref, b1_ref, w2_ref, b2_ref)
    # Identity covariance  ->  Cholesky factor L = I  ->  sample = loc + eps.
    out_ref[...] = (loc + eps_ref[...]).astype(out_ref.dtype)


# ----------------------------------------------------------------------------
# Wrapper
# ----------------------------------------------------------------------------
def _round_up(x, m):
    return ((x + m - 1) // m) * m


def diagonal_gaussian_policy_forward(obs, params, seed=None, sample=True,
                                     block_b=1024):
    """Pallas TPU implementation of DiagonalGaussianPolicy.forward.

    obs:    [B, obs_dim] float32
    params: dict with w1 [obs_dim, H] (bf16), b1 [1, H] (f32),
                      w2 [H, act_dim] (bf16), b2 [1, act_dim] (f32)
    seed:   int seed for the noise (required when sample=True)
    block_b: batch tile; multiple of 128, sized for v7x's smaller VMEM.
    """
    w1, b1, w2, b2 = params["w1"], params["b1"], params["w2"], params["b2"]
    B, obs_dim = obs.shape
    hidden = w1.shape[1]
    act_dim = w2.shape[1]

    # --- batch tiling: big tiles => pipelined DMA; pad ragged batches -------
    if B >= block_b:
        tb = block_b
    else:
        tb = _round_up(B, 8)                     # sublane-aligned single tile
    b_pad = _round_up(B, tb)
    if b_pad != B:
        obs = jnp.pad(obs, ((0, b_pad - B), (0, 0)))
    num_blocks = b_pad // tb

    out_shape = jax.ShapeDtypeStruct((b_pad, act_dim), jnp.float32)

    flops = 2 * b_pad * (obs_dim * hidden + hidden * act_dim)
    transcendentals = b_pad * hidden            # tanh
    bytes_accessed = (b_pad * obs_dim * 4            # obs (f32 in HBM)
                      + w1.size * 2 + w2.size * 2    # bf16 weights
                      + b1.size * 4 + b2.size * 4
                      + b_pad * act_dim * 4          # output
                      + (b_pad * act_dim * 4 if sample else 0))  # eps stream
    cost = pl.CostEstimate(flops=flops, transcendentals=transcendentals,
                           bytes_accessed=bytes_accessed)

    compiler_params = pltpu.CompilerParams(
        dimension_semantics=("parallel",),           # 2 TCs on v7x
        vmem_limit_bytes=32 * 1024 * 1024,           # headroom on v7x's 64 MiB
    )

    # TODO(synk): act_dim=8 keeps the output store at 8/128 lane density; the
    # lane-dense fix is to fuse this kernel into the action consumer or emit a
    # [B*act_dim/128, 128] slab — not done here to preserve the [B, act_dim]
    # module output shape.
    if sample:
        assert seed is not None, "seed required when sample=True"
        # TODO(synk): pltpu.prng_seed/prng_random_bits would keep noise fully
        # in-kernel, but they only lower under Mosaic; generate eps here and
        # stream it per-tile instead (the loc + eps add stays in-kernel).
        eps = jax.random.normal(jax.random.PRNGKey(int(seed)),
                                (b_pad, act_dim), dtype=jnp.float32)
        grid_spec = pltpu.PrefetchScalarGridSpec(
            num_scalar_prefetch=0,
            grid=(num_blocks,),
            in_specs=[
                pl.BlockSpec((tb, obs_dim), lambda i: (i, 0)),
                pl.BlockSpec((tb, act_dim), lambda i: (i, 0)),
                pl.BlockSpec((obs_dim, hidden), lambda i: (0, 0)),
                pl.BlockSpec((1, hidden), lambda i: (0, 0)),
                pl.BlockSpec((hidden, act_dim), lambda i: (0, 0)),
                pl.BlockSpec((1, act_dim), lambda i: (0, 0)),
            ],
            out_specs=pl.BlockSpec((tb, act_dim), lambda i: (i, 0)),
        )
        out = pl.pallas_call(
            _sample_kernel,
            out_shape=out_shape,
            grid_spec=grid_spec,
            compiler_params=compiler_params,
            cost_estimate=cost,
        )(obs, eps, w1, b1, w2, b2)
    else:
        grid_spec = pltpu.PrefetchScalarGridSpec(
            num_scalar_prefetch=0,
            grid=(num_blocks,),
            in_specs=[
                pl.BlockSpec((tb, obs_dim), lambda i: (i, 0)),
                pl.BlockSpec((obs_dim, hidden), lambda i: (0, 0)),
                pl.BlockSpec((1, hidden), lambda i: (0, 0)),
                pl.BlockSpec((hidden, act_dim), lambda i: (0, 0)),
                pl.BlockSpec((1, act_dim), lambda i: (0, 0)),
            ],
            out_specs=pl.BlockSpec((tb, act_dim), lambda i: (i, 0)),
        )
        out = pl.pallas_call(
            _loc_kernel,
            out_shape=out_shape,
            grid_spec=grid_spec,
            compiler_params=compiler_params,
            cost_estimate=cost,
        )(obs, w1, b1, w2, b2)

    return out[:B] if b_pad != B else out


def init_params(key, obs_dim, hidden, act_dim):
    k1, k2, k3, k4 = jax.random.split(key, 4)
    s1 = 1.0 / math.sqrt(obs_dim)
    s2 = 1.0 / math.sqrt(hidden)
    return {
        "w1": jax.random.uniform(k1, (obs_dim, hidden), jnp.float32,
                                 -s1, s1).astype(jnp.bfloat16),
        "b1": jax.random.uniform(k2, (1, hidden), jnp.float32, -s1, s1),
        "w2": jax.random.uniform(k3, (hidden, act_dim), jnp.float32,
                                 -s2, s2).astype(jnp.bfloat16),
        "b2": jax.random.uniform(k4, (1, act_dim), jnp.float32, -s2, s2),
    }


if __name__ == "__main__":
    key = jax.random.PRNGKey(0)
    k_param, k_obs1, k_obs2 = jax.random.split(key, 3)

    OBS_DIM, HIDDEN, ACT_DIM = 32, 64, 8
    params = init_params(k_param, OBS_DIM, HIDDEN, ACT_DIM)

    def reference_loc(obs):
        # Plain-JAX reference with the same dtype recipe as the kernel.
        h = jnp.dot(obs.astype(jnp.bfloat16), params["w1"],
                    preferred_element_type=jnp.float32) + params["b1"]
        h = jnp.tanh(h)
        return jnp.dot(h.astype(jnp.bfloat16), params["w2"],
                       preferred_element_type=jnp.float32) + params["b2"]

    # ---- small batch, single tile ------------------------------------------
    B1 = 8
    obs1 = jax.random.normal(k_obs1, (B1, OBS_DIM), dtype=jnp.float32)
    loc1 = jax.block_until_ready(
        diagonal_gaussian_policy_forward(obs1, params, sample=False))
    act1 = jax.block_until_ready(
        diagonal_gaussian_policy_forward(obs1, params, seed=1234, sample=True))
    assert loc1.shape == (B1, ACT_DIM) and act1.shape == (B1, ACT_DIM)
    assert jnp.allclose(loc1, reference_loc(obs1), atol=1e-2, rtol=1e-2)
    assert bool(jnp.all(jnp.isfinite(act1)))
    assert float(jnp.max(jnp.abs(act1 - loc1))) > 1e-3   # noise really added

    # ---- larger ragged batch: multi-tile grid + padding path ---------------
    B2 = 200
    obs2 = jax.random.normal(k_obs2, (B2, OBS_DIM), dtype=jnp.float32)
    loc2 = jax.block_until_ready(
        diagonal_gaussian_policy_forward(obs2, params, sample=False,
                                         block_b=128))
    act2 = jax.block_until_ready(
        diagonal_gaussian_policy_forward(obs2, params, seed=5678, sample=True,
                                         block_b=128))
    assert loc2.shape == (B2, ACT_DIM) and act2.shape == (B2, ACT_DIM)
    assert jnp.allclose(loc2, reference_loc(obs2), atol=1e-2, rtol=1e-2)

    eps2 = act2 - loc2            # should be ~N(0, I): identity covariance
    assert bool(jnp.all(jnp.isfinite(eps2)))
    assert abs(float(eps2.mean())) < 0.15
    assert 0.85 < float(eps2.std()) < 1.15

    print("KERNEL_OK")
</pallas_src>

<mosaic_0001>
module attributes {stable_mosaic.version = 11 : i64} {
  func.func @_loc_kernel(%arg0: i32, %arg1: memref<8x32xf32, #tpu.memory_space<vmem>>, %arg2: memref<32x64xbf16, #tpu.memory_space<vmem>>, %arg3: memref<1x64xf32, #tpu.memory_space<vmem>>, %arg4: memref<64x8xbf16, #tpu.memory_space<vmem>>, %arg5: memref<1x8xf32, #tpu.memory_space<vmem>>, %arg6: memref<8x8xf32, #tpu.memory_space<vmem>>) attributes {dimension_semantics = [#tpu.dimension_semantics<parallel>], iteration_bounds = array<i64: 1>, scalar_prefetch = 0 : i64, scratch_operands = 0 : i64, tpu.core_type = #tpu.core_type<tc>, window_params = [{transform_indices = @transform_0, window_bounds = array<i64: 8, 32>}, {pipeline_mode = #tpu.pipeline_mode<synchronous>, transform_indices = @transform_1, window_bounds = array<i64: 32, 64>}, {pipeline_mode = #tpu.pipeline_mode<synchronous>, transform_indices = @transform_2, window_bounds = array<i64: 1, 64>}, {pipeline_mode = #tpu.pipeline_mode<synchronous>, transform_indices = @transform_3, window_bounds = array<i64: 64, 8>}, {pipeline_mode = #tpu.pipeline_mode<synchronous>, transform_indices = @transform_4, window_bounds = array<i64: 1, 8>}, {transform_indices = @transform_5, window_bounds = array<i64: 8, 8>}]} {
    %c0 = arith.constant 0 : index
    %c0_0 = arith.constant 0 : index
    %0 = vector.load %arg1[%c0, %c0_0] : memref<8x32xf32, #tpu.memory_space<vmem>>, vector<8x32xf32>
    %1 = arith.truncf %0 : vector<8x32xf32> to vector<8x32xbf16>
    %c0_1 = arith.constant 0 : index
    %c0_2 = arith.constant 0 : index
    %2 = vector.load %arg2[%c0_1, %c0_2] : memref<32x64xbf16, #tpu.memory_space<vmem>>, vector<32x64xbf16>
    %cst = arith.constant dense<0.000000e+00> : vector<8x64xf32>
    %3 = tpu.matmul %1, %2, %cst {dimension_numbers = #tpu.dot_dimension_numbers<[1], [0], [0], [1], [0, 0, 1, 1], [], []>} : vector<8x32xbf16>, vector<32x64xbf16>, vector<8x64xf32> -> vector<8x64xf32>
    %c0_3 = arith.constant 0 : index
    %c0_4 = arith.constant 0 : index
    %4 = vector.load %arg3[%c0_3, %c0_4] : memref<1x64xf32, #tpu.memory_space<vmem>>, vector<1x64xf32>
    %5 = vector.broadcast %4 : vector<1x64xf32> to vector<8x64xf32>
    %6 = arith.addf %3, %5 : vector<8x64xf32>
    %7 = math.tanh %6 : vector<8x64xf32>
    %8 = arith.truncf %7 : vector<8x64xf32> to vector<8x64xbf16>
    %c0_5 = arith.constant 0 : index
    %c0_6 = arith.constant 0 : index
    %9 = vector.load %arg4[%c0_5, %c0_6] : memref<64x8xbf16, #tpu.memory_space<vmem>>, vector<64x8xbf16>
    %cst_7 = arith.constant dense<0.000000e+00> : vector<8x8xf32>
    %10 = tpu.matmul %8, %9, %cst_7 {dimension_numbers = #tpu.dot_dimension_numbers<[1], [0], [0], [1], [0, 0, 1, 1], [], []>} : vector<8x64xbf16>, vector<64x8xbf16>, vector<8x8xf32> -> vector<8x8xf32>
    %c0_8 = arith.constant 0 : index
    %c0_9 = arith.constant 0 : index
    %11 = vector.load %arg5[%c0_8, %c0_9] : memref<1x8xf32, #tpu.memory_space<vmem>>, vector<1x8xf32>
    %12 = vector.broadcast %11 : vector<1x8xf32> to vector<8x8xf32>
    %13 = arith.addf %10, %12 : vector<8x8xf32>
    %c0_10 = arith.constant 0 : index
    %c0_11 = arith.constant 0 : index
    %14 = vector.load %arg6[%c0_10, %c0_11] : memref<8x8xf32, #tpu.memory_space<vmem>>, vector<8x8xf32>
    tpu.vector_store %arg6[%c0_10, %c0_11], %13 {strides = array<i32>} : memref<8x8xf32, #tpu.memory_space<vmem>>, vector<8x8xf32>,
    return
  }
  func.func @transform_0(%arg0: i32) -> (i32, i32) {
    %c0_i32 = arith.constant 0 : i32
    %c0_i32_0 = arith.constant 0 : i32
    return %arg0, %c0_i32 : i32, i32
  }
  func.func @transform_1(%arg0: i32) -> (i32, i32) {
    %c0_i32 = arith.constant 0 : i32
    %c0_i32_0 = arith.constant 0 : i32
    %c0_i32_1 = arith.constant 0 : i32
    return %c0_i32, %c0_i32_0 : i32, i32
  }
  func.func @transform_2(%arg0: i32) -> (i32, i32) {
    %c0_i32 = arith.constant 0 : i32
    %c0_i32_0 = arith.constant 0 : i32
    %c0_i32_1 = arith.constant 0 : i32
    return %c0_i32, %c0_i32_0 : i32, i32
  }
  func.func @transform_3(%arg0: i32) -> (i32, i32) {
    %c0_i32 = arith.constant 0 : i32
    %c0_i32_0 = arith.constant 0 : i32
    %c0_i32_1 = arith.constant 0 : i32
    return %c0_i32, %c0_i32_0 : i32, i32
  }
  func.func @transform_4(%arg0: i32) -> (i32, i32) {
    %c0_i32 = arith.constant 0 : i32
    %c0_i32_0 = arith.constant 0 : i32
    %c0_i32_1 = arith.constant 0 : i32
    return %c0_i32, %c0_i32_0 : i32, i32
  }
  func.func @transform_5(%arg0: i32) -> (i32, i32) {
    %c0_i32 = arith.constant 0 : i32
    %c0_i32_0 = arith.constant 0 : i32
    return %arg0, %c0_i32 : i32, i32
  }
}

</mosaic_0001>

<bundles_post_ra>
// kernel: tpu_custom_call.1
= control target key start
LH: loop header
LB: loop body
LE: loop exit
PB: predicated region body
PF: predicated region fallthrough
CT: control target
= control target key end

     0   :  { %v263_v1 = vmov 0.0   ;;  %vm264_vm0 = vmmov 0   ;;  %s326_s0 = inlined_call_operand.vmem [shape: f32[8,32], index: 0, kind: input, shape index: {}]   ;;  %s327_s1 = inlined_call_operand.vmem [shape: bf16[32,64], index: 1, kind: input, shape index: {}]   ;;  %s328_s2 = inlined_call_operand.vmem [shape: f32[1,64], index: 2, kind: input, shape index: {}]   ;;  %s329_s3 = inlined_call_operand.vmem [shape: bf16[64,8], index: 3, kind: input, shape index: {}]   ;;  %s330_s4 = inlined_call_operand.vmem [shape: f32[1,8], index: 4, kind: input, shape index: {}]   ;;  %s331_s5 = inlined_call_operand.hbm [shape: f32[8,8], index: 5, kind: output, shape index: {}]  }
   0x1   :  { %v233_v0 = vld [vmem:[%s327_s1 + $0x8] sm:$0xff]   ;;  %210 = vmatprep.subr.bf16.mxu0 %v263_v1  ;;  %218 = vmatprep.subr.bf16.mxu1 %v263_v1  ;;  %v234_v2 = vld [vmem:[%s327_s1] sm:$0xff]  }
   0x2   :  { %211 = vmatpush3.bf16.msra.mxu0 %v233_v0  ;;  %214 = vmatprep.mubr.msk.bf16.mxu0 %vm264_vm0, %v263_v1  ;;  %v22_v3 = vld [vmem:[%s326_s0] sm:$0xff] }
   0x3   :  { %212 = vmatprep.subr.bf16.mxu0 %v263_v1  ;;  %226 = vmatprep.mubr.msk.bf16.mxu1 %vm264_vm0, %v263_v1  ;;  %v23_v4 = vpack.c.bf16 %v22_v3, %v22_v3 }
   0x4   :  { %10 = vsyncpa [#allocation3], 0  ;;  %vm47_vm1 = vcmask 261120   ;;  %v235_v5 = vld [vmem:[%s329_s3 + $0x18] sm:$0xff]   ;;  %v236_v6 = vld [vmem:[%s329_s3 + $0x10] sm:$0xff]   ;;  %vm132_vm2 = vcmask 523264  }
   0x5   :  { %219 = vmatpush3.bf16.msra.mxu1 %v235_v5  ;;  %v237_v7 = vld [vmem:[%s329_s3 + $0x8] sm:$0xff]   ;;  %v238_v8 = vld [vmem:[%s329_s3] sm:$0xff]   ;;  %s265_s3 = smov [#allocation2]   ;;  %vm176_vm3 = vcmask 64512  }
   0x6   :  { %213 = vmatpush3.bf16.msra.mxu0 %v234_v2  ;;  %220 = vmatprep.subr.bf16.mxu1 %v263_v1  ;;  %v192_v9 = vld [vmem:[%s328_s2] ss:$0 sm:$0xff]  ;;  %s184_s9 = sshll.u32 %s265_s3, 4  ;;  %s185_s9 = int_to_ptr.vmem [resolvable:$true] %s184_s9 }
   0x7   :  { %v196_v17 = vld [vmem:[%s330_s4] ss:$0 sm:$0xff]  ;;  %s241_s2 = scalar_lea.vmem %s185_s9, 128  ;;  %p246_p1 = scmp.lt.s32.totalorder %s185_s9, %s185_s9 }
   0x8   :  { %p242_p0 = scmp.ne.s32.totalorder %s185_s9, %s241_s2  ;;  %p247_p2 = scmp.lt.s32.totalorder %s241_s2, %s241_s2 }
   0x9   :  { %215 = vmatmul.mubr.msk.bf16.vlgmr.msra.gmra.mxu0 %vm47_vm1, %v23_v4  ;;  %221 = vmatpush3.bf16.msra.mxu1 %v236_v6 }
   0xa   :  { %222 = vmatprep.subr.bf16.mxu1 %v263_v1  ;;  %p248_p3 = por %p247_p2, %p246_p1 }
   0xc   :  { %p249_p4 = pnand %p248_p3, %p242_p0 }
   0xd   :  { %223 = vmatpush3.bf16.msra.mxu1 %v237_v7 }
   0xe   :  { %224 = vmatprep.subr.bf16.mxu1 %v263_v1 }
  0x11   :  { %225 = vmatpush3.bf16.msra.mxu1 %v238_v8 }
  0xc9   :  { %v85_v10 = vpop.f32.mrf.mxu0 }
  0xca   :  { %v86_v11 = vadd.f32 %v192_v9, %v85_v10 }
  0xcb   :  { %v216_v12 = vpop.f32.mrf.mxu0 }
  0xcc   :  { %239 = vtanh.f32 %v86_v11 }
  0xcd   :  { %v88_v13 = vpop.f32.mrf.mxu0 }
  0xcf   :  { %v217_v14 = vpop.f32.mrf.mxu0 }
  0xd9   :  { %v240_v15 = vpop.eup %239 }
  0xda   :  { %v92_v16 = vpack.c.bf16 %v240_v15, %v240_v15 }
  0xdc   :  { %227 = vmatmul.mubr.msk.bf16.vlgmr.msra.gmra.mxu1 %vm132_vm2, %v92_v16 }
 0x19c   :  { %v170_v18 = vpop.f32.mrf.mxu1 }
 0x19d   :  { %v171_v19 = vadd.f32 %v196_v17, %v170_v18 }
 0x19e   :  { %v228_v20 = vpop.f32.mrf.mxu1 }
 0x19f   :  { %177 = vst.msk [vmem:[#allocation2] sm:$0xff] %vm176_vm3, %v171_v19 }
 0x1a0   :  { %v173_v21 = vpop.f32.mrf.mxu1 }
 0x1a1   :  { %252 = shalt.err (!%p249_p4)
}
 0x1a2   :  { %187 = dma.vmem_to_hbm [thread:$0]  %s185_s9, 128, %s331_s5, [#allocation3]   ;;  %v229_v22 = vpop.f32.mrf.mxu1 }
 0x1a3   :  { %261 = dma.done.wait [#allocation3], 128  }
 0x1a4   :  { %262 = vsyncadd [#allocation3], 4294967168 }
 0x1a5   :  { %191 = vsyncpa [#allocation3], 1 }

</bundles_post_ra>
